<compile_context>
chip_gen: v5e
topology: v5e:2x2
jax: 0.10.0
libtpu: 0.0.40
codegen_flags: <defaults>
</compile_context>

<pallas_src>
import functools

import jax
import jax.numpy as jnp
from jax.experimental import pallas as pl
from jax.experimental.pallas import tpu as pltpu


def _make_kernel(K, Wp, L):
    """Kernel closure over static conv geometry (K taps, padded width Wp, lane tile L)."""
    KK = K * K
    shifts = [kh * Wp + kw for kh in range(K) for kw in range(K)]  # per-tap lane shift

    def kernel(w_ref, b_ref, a_ref, x_ref, xh_ref, o_ref):
        # w_ref : (K*K, Cout, Cin)  conv weights, one (Cout, Cin) slab per tap  (VMEM, resident)
        # b_ref : (Cout, 1)         conv bias                                    (VMEM, resident)
        # a_ref : (1,)              PReLU slope (single shared scalar)           (SMEM)
        # x_ref : (Cin, L)          current lane tile of flattened padded input
        # xh_ref: (Cin, L)          next lane tile (halo source for the tap shifts)
        # o_ref : (Cout, L)         conv + bias + PReLU, lane-dense
        xcat = jnp.concatenate([x_ref[...], xh_ref[...]], axis=1)  # (Cin, 2L)
        acc = None
        for kk in range(KK):
            s = shifts[kk]                      # static lane shift for tap (kh, kw)
            xs = xcat[:, s:s + L]               # (Cin, L) shifted tap view (in VMEM)
            part = jnp.dot(w_ref[kk], xs, preferred_element_type=jnp.float32)
            acc = part if acc is None else acc + part
        acc = acc + b_ref[...]                  # (Cout, 1) broadcast over lanes
        alpha = a_ref[0]
        o_ref[...] = jnp.where(acc >= 0.0, acc, alpha * acc).astype(o_ref.dtype)

    return kernel


def subpixel_conv2d(x_nchw, weight_oihw, bias, alpha, *, kernel_size, scaling_factor):
    N, Cin, H, W = x_nchw.shape
    K = kernel_size
    r = scaling_factor
    Cout = Cin * r * r
    p = K // 2
    Hp, Wp = H + 2 * p, W + 2 * p

    # --- Cheap XLA glue: zero-pad (padding_mode='zeros') and flatten channel-major,
    # lane-dense.  This is a ~1x pass over the small raw input (no 9x im2col).
    xp = jnp.pad(x_nchw, ((0, 0), (0, 0), (p, p), (p, p)))
    xf = xp.transpose(1, 0, 2, 3).reshape(Cin, N * Hp * Wp).astype(jnp.float32)

    cols = N * Hp * Wp
    LANE = 128
    smax = (K - 1) * Wp + (K - 1)                       # largest in-kernel tap shift
    min_tile = max(LANE, pl.cdiv(smax, LANE) * LANE)    # one-block halo must cover it
    # ~4 parallel grid steps (both v7x TCs busy), capped at 4096 lanes per step.
    tile = max(min_tile, min(4096, pl.cdiv(pl.cdiv(cols, 4), LANE) * LANE))
    nb = pl.cdiv(cols, tile)
    cols_pad = nb * tile
    if cols_pad != cols:
        xf = jnp.pad(xf, ((0, 0), (0, cols_pad - cols)))   # pads only the small input

    # Weights as (K*K, Cout, Cin) so each tap is a clean leading-axis load.
    wk = weight_oihw.transpose(2, 3, 0, 1).reshape(K * K, Cout, Cin).astype(jnp.float32)
    bcol = bias.reshape(Cout, 1).astype(jnp.float32)
    a = jnp.asarray(alpha, jnp.float32).reshape(1)

    kernel = _make_kernel(K, Wp, tile)
    halo_map = lambda i: (0, jnp.minimum(i + 1, nb - 1))  # clamp: last block's halo is harmless

    y = pl.pallas_call(
        kernel,
        out_shape=jax.ShapeDtypeStruct((Cout, cols_pad), jnp.float32),
        grid_spec=pltpu.PrefetchScalarGridSpec(
            num_scalar_prefetch=0,
            grid=(nb,),
            in_specs=[
                pl.BlockSpec((K * K, Cout, Cin), lambda i: (0, 0, 0)),  # weights (resident)
                pl.BlockSpec((Cout, 1), lambda i: (0, 0)),              # bias (resident)
                pl.BlockSpec(memory_space=pltpu.MemorySpace.SMEM),      # PReLU alpha
                pl.BlockSpec((Cin, tile), lambda i: (0, i)),            # input lane tile
                pl.BlockSpec((Cin, tile), halo_map),                    # next tile (halo)
            ],
            out_specs=pl.BlockSpec((Cout, tile), lambda i: (0, i)),
        ),
        compiler_params=pltpu.CompilerParams(
            dimension_semantics=("parallel",)),
    )(wk, bcol, a, xf, xf)

    # Valid conv outputs sit at padded-grid columns n*Hp*Wp + h*Wp + w (h<H, w<W).
    y = y[:, :cols].reshape(Cout, N, Hp, Wp)[:, :, :H, :W]          # (Cout, N, H, W)
    # PixelShuffle(r): out[n, c, h*r+i, w*r+j] = y[c*r*r + i*r + j, n, h, w]
    y = y.reshape(Cin, r, r, N, H, W).transpose(3, 0, 4, 1, 5, 2)
    return y.reshape(N, Cin, H * r, W * r).astype(x_nchw.dtype)


def reference(x_nchw, weight_oihw, bias, alpha, kernel_size, scaling_factor):
    K, r = kernel_size, scaling_factor
    p = K // 2
    y = jax.lax.conv_general_dilated(
        x_nchw, weight_oihw, window_strides=(1, 1),
        padding=((p, p), (p, p)),
        dimension_numbers=("NCHW", "OIHW", "NCHW"))
    y = y + bias[None, :, None, None]
    N, Co, H, W = y.shape
    C = Co // (r * r)
    y = y.reshape(N, C, r, r, H, W).transpose(0, 1, 4, 2, 5, 3).reshape(N, C, H * r, W * r)
    return jnp.where(y >= 0, y, alpha * y)


if __name__ == "__main__":
    # Module hyperparameters (from SubPixelConv2d.__init__)
    in_channels = 4
    kernel_size = 3
    scaling_factor = 2
    out_channels = in_channels * scaling_factor ** 2

    # Deterministic parameter / input init
    key = jax.random.PRNGKey(0)
    kw_, kb_, kx_ = jax.random.split(key, 3)
    fan_in = in_channels * kernel_size * kernel_size
    bound = float(1.0 / (fan_in ** 0.5))
    weight = jax.random.uniform(
        kw_, (out_channels, in_channels, kernel_size, kernel_size),
        jnp.float32, minval=-bound, maxval=bound)
    bias = jax.random.uniform(
        kb_, (out_channels,), jnp.float32, minval=-bound, maxval=bound)
    prelu_alpha = jnp.float32(0.25)  # nn.PReLU() default: 1 shared param, init 0.25

    x = jax.random.normal(kx_, (2, in_channels, 16, 16), jnp.float32)  # NCHW

    fn = jax.jit(functools.partial(
        subpixel_conv2d, kernel_size=kernel_size, scaling_factor=scaling_factor))
    out = jax.block_until_ready(fn(x, weight, bias, prelu_alpha))

    ref = reference(x, weight, bias, prelu_alpha, kernel_size, scaling_factor)
    assert out.shape == (2, in_channels, 32, 32), out.shape
    assert jnp.allclose(out, ref, rtol=1e-4, atol=1e-4), (
        float(jnp.max(jnp.abs(out - ref))))

    print("KERNEL_OK")
</pallas_src>

<mosaic_0001>
module attributes {stable_mosaic.version = 11 : i64} {
  func.func @kernel(%arg0: i32, %arg1: memref<9x16x4xf32, #tpu.memory_space<vmem>>, %arg2: memref<16x1xf32, #tpu.memory_space<vmem>>, %arg3: memref<1xf32, #tpu.memory_space<smem>>, %arg4: memref<4x256xf32, #tpu.memory_space<vmem>>, %arg5: memref<4x256xf32, #tpu.memory_space<vmem>>, %arg6: memref<16x256xf32, #tpu.memory_space<vmem>>) attributes {dimension_semantics = [#tpu.dimension_semantics<parallel>], iteration_bounds = array<i64: 3>, scalar_prefetch = 0 : i64, scratch_operands = 0 : i64, tpu.core_type = #tpu.core_type<tc>, window_params = [{pipeline_mode = #tpu.pipeline_mode<synchronous>, transform_indices = @transform_0, window_bounds = array<i64: 9, 16, 4>}, {pipeline_mode = #tpu.pipeline_mode<synchronous>, transform_indices = @transform_1, window_bounds = array<i64: 16, 1>}, {transform_indices = @transform_2, window_bounds = array<i64: 1>}, {transform_indices = @transform_3, window_bounds = array<i64: 4, 256>}, {transform_indices = @transform_4, window_bounds = array<i64: 4, 256>}, {transform_indices = @transform_5, window_bounds = array<i64: 16, 256>}]} {
    %c0 = arith.constant 0 : index
    %c0_0 = arith.constant 0 : index
    %0 = vector.load %arg4[%c0, %c0_0] : memref<4x256xf32, #tpu.memory_space<vmem>>, vector<4x256xf32>
    %c0_1 = arith.constant 0 : index
    %c0_2 = arith.constant 0 : index
    %1 = vector.load %arg5[%c0_1, %c0_2] : memref<4x256xf32, #tpu.memory_space<vmem>>, vector<4x256xf32>
    %2 = tpu.concatenate %0, %1 in 1 : vector<4x256xf32>, vector<4x256xf32> -> vector<4x512xf32>
    %3 = vector.extract_strided_slice %2 {offsets = [0, 0], sizes = [4, 256], strides = [1, 1]} : vector<4x512xf32> to vector<4x256xf32>
    %c0_3 = arith.constant 0 : index
    %c0_4 = arith.constant 0 : index
    %c0_5 = arith.constant 0 : index
    %4 = vector.load %arg1[%c0_3, %c0_4, %c0_5] : memref<9x16x4xf32, #tpu.memory_space<vmem>>, vector<1x16x4xf32>
    %5 = vector.shape_cast %4 : vector<1x16x4xf32> to vector<16x4xf32>
    %cst = arith.constant dense<0.000000e+00> : vector<16x256xf32>
    %6 = tpu.matmul %5, %3, %cst {dimension_numbers = #tpu.dot_dimension_numbers<[1], [0], [0], [1], [0, 0, 1, 1], [], []>} : vector<16x4xf32>, vector<4x256xf32>, vector<16x256xf32> -> vector<16x256xf32>
    %7 = vector.extract_strided_slice %2 {offsets = [0, 1], sizes = [4, 256], strides = [1, 1]} : vector<4x512xf32> to vector<4x256xf32>
    %c1 = arith.constant 1 : index
    %c0_6 = arith.constant 0 : index
    %c0_7 = arith.constant 0 : index
    %8 = vector.load %arg1[%c1, %c0_6, %c0_7] : memref<9x16x4xf32, #tpu.memory_space<vmem>>, vector<1x16x4xf32>
    %9 = vector.shape_cast %8 : vector<1x16x4xf32> to vector<16x4xf32>
    %cst_8 = arith.constant dense<0.000000e+00> : vector<16x256xf32>
    %10 = tpu.matmul %9, %7, %cst_8 {dimension_numbers = #tpu.dot_dimension_numbers<[1], [0], [0], [1], [0, 0, 1, 1], [], []>} : vector<16x4xf32>, vector<4x256xf32>, vector<16x256xf32> -> vector<16x256xf32>
    %11 = arith.addf %6, %10 : vector<16x256xf32>
    %12 = vector.extract_strided_slice %2 {offsets = [0, 2], sizes = [4, 256], strides = [1, 1]} : vector<4x512xf32> to vector<4x256xf32>
    %c2 = arith.constant 2 : index
    %c0_9 = arith.constant 0 : index
    %c0_10 = arith.constant 0 : index
    %13 = vector.load %arg1[%c2, %c0_9, %c0_10] : memref<9x16x4xf32, #tpu.memory_space<vmem>>, vector<1x16x4xf32>
    %14 = vector.shape_cast %13 : vector<1x16x4xf32> to vector<16x4xf32>
    %cst_11 = arith.constant dense<0.000000e+00> : vector<16x256xf32>
    %15 = tpu.matmul %14, %12, %cst_11 {dimension_numbers = #tpu.dot_dimension_numbers<[1], [0], [0], [1], [0, 0, 1, 1], [], []>} : vector<16x4xf32>, vector<4x256xf32>, vector<16x256xf32> -> vector<16x256xf32>
    %16 = arith.addf %11, %15 : vector<16x256xf32>
    %17 = vector.extract_strided_slice %2 {offsets = [0, 18], sizes = [4, 256], strides = [1, 1]} : vector<4x512xf32> to vector<4x256xf32>
    %c3 = arith.constant 3 : index
    %c0_12 = arith.constant 0 : index
    %c0_13 = arith.constant 0 : index
    %18 = vector.load %arg1[%c3, %c0_12, %c0_13] : memref<9x16x4xf32, #tpu.memory_space<vmem>>, vector<1x16x4xf32>
    %19 = vector.shape_cast %18 : vector<1x16x4xf32> to vector<16x4xf32>
    %cst_14 = arith.constant dense<0.000000e+00> : vector<16x256xf32>
    %20 = tpu.matmul %19, %17, %cst_14 {dimension_numbers = #tpu.dot_dimension_numbers<[1], [0], [0], [1], [0, 0, 1, 1], [], []>} : vector<16x4xf32>, vector<4x256xf32>, vector<16x256xf32> -> vector<16x256xf32>
    %21 = arith.addf %16, %20 : vector<16x256xf32>
    %22 = vector.extract_strided_slice %2 {offsets = [0, 19], sizes = [4, 256], strides = [1, 1]} : vector<4x512xf32> to vector<4x256xf32>
    %c4 = arith.constant 4 : index
    %c0_15 = arith.constant 0 : index
    %c0_16 = arith.constant 0 : index
    %23 = vector.load %arg1[%c4, %c0_15, %c0_16] : memref<9x16x4xf32, #tpu.memory_space<vmem>>, vector<1x16x4xf32>
    %24 = vector.shape_cast %23 : vector<1x16x4xf32> to vector<16x4xf32>
    %cst_17 = arith.constant dense<0.000000e+00> : vector<16x256xf32>
    %25 = tpu.matmul %24, %22, %cst_17 {dimension_numbers = #tpu.dot_dimension_numbers<[1], [0], [0], [1], [0, 0, 1, 1], [], []>} : vector<16x4xf32>, vector<4x256xf32>, vector<16x256xf32> -> vector<16x256xf32>
    %26 = arith.addf %21, %25 : vector<16x256xf32>
    %27 = vector.extract_strided_slice %2 {offsets = [0, 20], sizes = [4, 256], strides = [1, 1]} : vector<4x512xf32> to vector<4x256xf32>
    %c5 = arith.constant 5 : index
    %c0_18 = arith.constant 0 : index
    %c0_19 = arith.constant 0 : index
    %28 = vector.load %arg1[%c5, %c0_18, %c0_19] : memref<9x16x4xf32, #tpu.memory_space<vmem>>, vector<1x16x4xf32>
    %29 = vector.shape_cast %28 : vector<1x16x4xf32> to vector<16x4xf32>
    %cst_20 = arith.constant dense<0.000000e+00> : vector<16x256xf32>
    %30 = tpu.matmul %29, %27, %cst_20 {dimension_numbers = #tpu.dot_dimension_numbers<[1], [0], [0], [1], [0, 0, 1, 1], [], []>} : vector<16x4xf32>, vector<4x256xf32>, vector<16x256xf32> -> vector<16x256xf32>
    %31 = arith.addf %26, %30 : vector<16x256xf32>
    %32 = vector.extract_strided_slice %2 {offsets = [0, 36], sizes = [4, 256], strides = [1, 1]} : vector<4x512xf32> to vector<4x256xf32>
    %c6 = arith.constant 6 : index
    %c0_21 = arith.constant 0 : index
    %c0_22 = arith.constant 0 : index
    %33 = vector.load %arg1[%c6, %c0_21, %c0_22] : memref<9x16x4xf32, #tpu.memory_space<vmem>>, vector<1x16x4xf32>
    %34 = vector.shape_cast %33 : vector<1x16x4xf32> to vector<16x4xf32>
    %cst_23 = arith.constant dense<0.000000e+00> : vector<16x256xf32>
    %35 = tpu.matmul %34, %32, %cst_23 {dimension_numbers = #tpu.dot_dimension_numbers<[1], [0], [0], [1], [0, 0, 1, 1], [], []>} : vector<16x4xf32>, vector<4x256xf32>, vector<16x256xf32> -> vector<16x256xf32>
    %36 = arith.addf %31, %35 : vector<16x256xf32>
    %37 = vector.extract_strided_slice %2 {offsets = [0, 37], sizes = [4, 256], strides = [1, 1]} : vector<4x512xf32> to vector<4x256xf32>
    %c7 = arith.constant 7 : index
    %c0_24 = arith.constant 0 : index
    %c0_25 = arith.constant 0 : index
    %38 = vector.load %arg1[%c7, %c0_24, %c0_25] : memref<9x16x4xf32, #tpu.memory_space<vmem>>, vector<1x16x4xf32>
    %39 = vector.shape_cast %38 : vector<1x16x4xf32> to vector<16x4xf32>
    %cst_26 = arith.constant dense<0.000000e+00> : vector<16x256xf32>
    %40 = tpu.matmul %39, %37, %cst_26 {dimension_numbers = #tpu.dot_dimension_numbers<[1], [0], [0], [1], [0, 0, 1, 1], [], []>} : vector<16x4xf32>, vector<4x256xf32>, vector<16x256xf32> -> vector<16x256xf32>
    %41 = arith.addf %36, %40 : vector<16x256xf32>
    %42 = vector.extract_strided_slice %2 {offsets = [0, 38], sizes = [4, 256], strides = [1, 1]} : vector<4x512xf32> to vector<4x256xf32>
    %c8 = arith.constant 8 : index
    %c0_27 = arith.constant 0 : index
    %c0_28 = arith.constant 0 : index
    %43 = vector.load %arg1[%c8, %c0_27, %c0_28] : memref<9x16x4xf32, #tpu.memory_space<vmem>>, vector<1x16x4xf32>
    %44 = vector.shape_cast %43 : vector<1x16x4xf32> to vector<16x4xf32>
    %cst_29 = arith.constant dense<0.000000e+00> : vector<16x256xf32>
    %45 = tpu.matmul %44, %42, %cst_29 {dimension_numbers = #tpu.dot_dimension_numbers<[1], [0], [0], [1], [0, 0, 1, 1], [], []>} : vector<16x4xf32>, vector<4x256xf32>, vector<16x256xf32> -> vector<16x256xf32>
    %46 = arith.addf %41, %45 : vector<16x256xf32>
    %c0_30 = arith.constant 0 : index
    %c0_31 = arith.constant 0 : index
    %47 = vector.load %arg2[%c0_30, %c0_31] : memref<16x1xf32, #tpu.memory_space<vmem>>, vector<16x1xf32>
    %48 = vector.broadcast %47 : vector<16x1xf32> to vector<16x256xf32>
    %49 = arith.addf %46, %48 : vector<16x256xf32>
    %c0_32 = arith.constant 0 : index
    %50 = memref.load %arg3[%c0_32] : memref<1xf32, #tpu.memory_space<smem>>
    %cst_33 = arith.constant 0.000000e+00 : f32
    %51 = vector.broadcast %cst_33 : f32 to vector<16x256xf32>
    %52 = arith.cmpf oge, %49, %51 : vector<16x256xf32>
    %53 = vector.broadcast %50 : f32 to vector<16x256xf32>
    %54 = arith.mulf %53, %49 : vector<16x256xf32>
    %55 = arith.select %52, %49, %54 : vector<16x256xi1>, vector<16x256xf32>
    %c0_34 = arith.constant 0 : index
    %c0_35 = arith.constant 0 : index
    %56 = vector.load %arg6[%c0_34, %c0_35] : memref<16x256xf32, #tpu.memory_space<vmem>>, vector<16x256xf32>
    tpu.vector_store %arg6[%c0_34, %c0_35], %55 {strides = array<i32>} : memref<16x256xf32, #tpu.memory_space<vmem>>, vector<16x256xf32>,
    return
  }
  func.func @transform_0(%arg0: i32) -> (i32, i32, i32) {
    %c0_i32 = arith.constant 0 : i32
    %c0_i32_0 = arith.constant 0 : i32
    %c0_i32_1 = arith.constant 0 : i32
    %c0_i32_2 = arith.constant 0 : i32
    return %c0_i32, %c0_i32_0, %c0_i32_1 : i32, i32, i32
  }
  func.func @transform_1(%arg0: i32) -> (i32, i32) {
    %c0_i32 = arith.constant 0 : i32
    %c0_i32_0 = arith.constant 0 : i32
    %c0_i32_1 = arith.constant 0 : i32
    return %c0_i32, %c0_i32_0 : i32, i32
  }
  func.func @transform_2(%arg0: i32) -> i32 {
    %c0_i32 = arith.constant 0 : i32
    %c0_i32_0 = arith.constant 0 : i32
    return %c0_i32 : i32
  }
  func.func @transform_3(%arg0: i32) -> (i32, i32) {
    %c0_i32 = arith.constant 0 : i32
    %c0_i32_0 = arith.constant 0 : i32
    return %c0_i32, %arg0 : i32, i32
  }
  func.func @transform_4(%arg0: i32) -> (i32, i32) {
    %c1_i32 = arith.constant 1 : i32
    %0 = arith.addi %arg0, %c1_i32 : i32
    %c2_i32 = arith.constant 2 : i32
    %1 = arith.minsi %0, %c2_i32 : i32
    %c0_i32 = arith.constant 0 : i32
    %c0_i32_0 = arith.constant 0 : i32
    return %c0_i32, %1 : i32, i32
  }
  func.func @transform_5(%arg0: i32) -> (i32, i32) {
    %c0_i32 = arith.constant 0 : i32
    %c0_i32_0 = arith.constant 0 : i32
    return %c0_i32, %arg0 : i32, i32
  }
}

</mosaic_0001>

<bundles_post_ra>
// kernel: subpixel_conv2d.1
= control target key start
LH: loop header
LB: loop body
LE: loop exit
PB: predicated region body
PF: predicated region fallthrough
CT: control target
= control target key end

     0   :  { %s1397_s0 = inlined_call_operand.vmem [shape: f32[9,16,4], index: 0, kind: input, shape index: {}]   ;;  %s1398_s1 = inlined_call_operand.vmem [shape: f32[16,1], index: 1, kind: input, shape index: {}]   ;;  %s1399_s2 = inlined_call_operand.<no memory space> [shape: f32[1], index: 2, kind: input, shape index: {}]   ;;  %s1400_s3 = inlined_call_operand.vmem [shape: f32[4,768], index: 3, kind: input, shape index: {}, may-alias: {3,4}]   ;;  %s1401_s4 = inlined_call_operand.vmem [shape: f32[4,768], index: 4, kind: input, shape index: {}, may-alias: {3,4}]   ;;  %s1402_s5 = inlined_call_operand.vmem [shape: f32[16,768], index: 5, kind: output, shape index: {}]  }
   0x1   :  { %10 = sst [smem:[#allocation2]] %s1399_s2 }
   0x2   :  { %s1225_s20 = smov 0   ;;  %s1227_s21 = smov 0  }
   0x3   :  { %s1229_s22 = smov 0  }
   0x4 LB: > { %s1238_s2 = sadd.s32 4294967295, %s1181_s22   ;;  %s1240_s23 = sadd.s32 1, %s1181_s22   ;;  %s1181_s22 = sphi %s1229_s22, %s1406_s22   ;;  %s1177_s21 = sphi %s1227_s21, %s1405_s21   ;;  %s1173_s20 = sphi %s1225_s20, %s1404_s20  }
   0x5   : > { %s141_s24 = ssub.s32 %s1181_s22, %s1240_s23  ;;  %s144_s25 = sadd.s32 1, %s1177_s21 }
   0x6   : > { %p142_p0 = scmp.eq.s32.totalorder %s141_s24, 0  ;;  %p154_p1 = scmp.ne.s32.totalorder %s1177_s21, %s1173_s20 }
   0x7   : > { %p155_p2 = scmp.eq.s32.totalorder %s1238_s2, 2  ;;  %p1040_p3 = scmp.ge.s32.totalorder %s1181_s22, 1 }
   0x8   : > { %s1248_s26 = scalar_select %p142_p0, %s1177_s21, %s144_s25  }
   0x9   : > { %p1250_p4 = por %p155_p2, %p154_p1  ;;  %p212_p5 = scmp.lt.s32.totalorder %s1181_s22, 4 }
   0xb   : > { %p213_p6 = pnand %p1040_p3, %p212_p5 }
   0xc   : > { %s1042_s28 = sshll.u32 (!%p213_p6), %s1238_s2, 1  ;;  %s253_s29 = sadd.s32 (!%p213_p6), 1, %s1238_s2 }
   0xd   : > { %216 = sbr.rel (%p213_p6) target bundleno = 371 (0x173), region = 40  ;;  %p248_p7 = scmp.lt.s32.totalorder (!%p213_p6), %s1042_s28, 5 }
   0xe   : > { %p254_p8 = scmp.lt.s32.totalorder (!%p213_p6), %s253_s29, 2  ;;  %s1183_s14 = smov (!%p213_p6), 127  }
   0xf   : > { %s1184_s15 = smov (!%p213_p6), 126   ;;  %s1185_s16 = smov (!%p213_p6), 110  }
  0x10   : > { %s1186_s17 = smov (!%p213_p6), 109   ;;  %s1187_s18 = smov (!%p213_p6), 108  }
  0x11   : > { %s1188_s19 = smov (!%p213_p6), 92   ;;  %s1189_s22 = smov (!%p213_p6), 91  }
  0x12   : > { %s1408_s28 = smov (!%p248_p7, %s1042_s28), 5  ;;  %s1410_s29 = smov (!%p254_p8, %s253_s29), 2  ;;  %vm286_vm0 = vcmask 1039360   ;;  %vm296_vm1 = vcmask 1043456   ;;  %vm412_vm2 = vcmask 1031168   ;;  %v1047_v12 = vld [vmem:[%s1397_s0 + $0x18] sm:$0xff] }
  0x13   : > { %s1043_s30 = sshll.u32 %s1408_s28, 2  ;;  %s1044_s9 = sshll.u32 %s1410_s29, 1  ;;  %vm289_vm3 = vcmask 31744   ;;  %v1046_v14 = vld [vmem:[%s1397_s0 + $0x10] sm:$0xff]  ;;  %v275_v19 = vld [vmem:[%s1397_s0] sm:$0xff]  ;;  %vm484_vm4 = vcmask 900096  }
  0x14   : > { %s251_s8 = scalar_lea.vmem %s1400_s3, %s1043_s30  ;;  %p257_p9 = scmp.lt.s32.totalorder %s1044_s9, 5  ;;  %v1060_v20 = vld [vmem:[%s1397_s0 + $0x20] sm:$0xff]  ;;  %v276_v26 = vld [vmem:[%s1397_s0 + $0x8] sm:$0xff]  ;;  %vm556_vm5 = vcmask 891904   ;;  %v1068_v33 = vld [vmem:[%s1397_s0 + $0x30] sm:$0xff]  ;;  %vm628_vm6 = vcmask 883712  }
  0x15   : > { %v266_v0 = vld [vmem:[%s251_s8] sm:$0xff]  ;;  %s1190_s24 = smov 90   ;;  %v1061_v27 = vld [vmem:[%s1397_s0 + $0x28] sm:$0xff]  ;;  %v1069_v38 = vld [vmem:[%s1397_s0 + $0x38] sm:$0xff]  ;;  %vm700_vm7 = vcmask 752640   ;;  %v1191_v45 = vmov 0  }
  0x16   : > { %269 = vst [vmem:[#allocation1] ss:$2 sm:$0xff] %v266_v0  ;;  %s1412_s9 = smov (!%p257_p9, %s1044_s9), 5  ;;  %v1076_v34 = vld [vmem:[%s1397_s0 + $0x40] sm:$0xff]  ;;  %v1077_v41 = vld [vmem:[%s1397_s0 + $0x48] sm:$0xff]  ;;  %1157 = vset.pattern.permute.xlu0 %v1191_v45  ;;  %1158 = vset.pattern.permute.xlu1 %v1191_v45  ;;  %v1084_v48 = vld [vmem:[%s1397_s0 + $0x50] sm:$0xff] }
  0x17   : > { %s1045_s10 = sshll.u32 %s1412_s9, 2  ;;  %v907_v42 = vld [vmem:[%s1398_s1] sm:$0xff]  ;;  %v908_v43 = vld [vmem:[%s1398_s1 + $0x8] sm:$0xff]  ;;  %vm772_vm8 = vcmask 744448   ;;  %v1085_v55 = vld [vmem:[%s1397_s0 + $0x58] sm:$0xff]  ;;  %vm844_vm9 = vcmask 736256  }
  0x18   : > { %s260_s13 = scalar_lea.vmem %s1401_s4, %s1045_s10  ;;  %v1092_v49 = vld [vmem:[%s1397_s0 + $0x60] sm:$0xff]  ;;  %v1093_v56 = vld [vmem:[%s1397_s0 + $0x68] sm:$0xff]  ;;  %v1100_v62 = vld [vmem:[%s1397_s0 + $0x70] sm:$0xff]  ;;  %s923_s25 = sld [smem:[#allocation2]] }
  0x19   : > { %v267_v1 = vld [vmem:[%s260_s13] sm:$0xff]  ;;  %v1101_v0 = vld [vmem:[%s1397_s0 + $0x78] sm:$0xff]  ;;  %s244_s28 = sand.u32 1, %s1173_s20   ;;  %s1121_s30 = sshll.u32 (%p1250_p4), %s1238_s2, 4 }
  0x1a   : > { %v1108_v63 = vld [vmem:[%s1397_s0 + $0x80] sm:$0xff]  ;;  %s1041_s29 = sshll.u32 %s244_s28, 5  ;;  %s950_s8 = scalar_lea.vmem (%p1250_p4), %s1402_s5, %s1121_s30 }
  0x1b   : > { %s246_s20 = scalar_lea.vmem [#allocation3], %s1041_s29 }
  0x1d   : > { %v270_v2 = vld.sshfl [vmem:[#allocation1] sm:$0xff pattern:$0x75316420]  ;;  %v271_v3 = vld.sshfl [vmem:[#allocation1 + $0x8] sm:$0xff pattern:$0x75316420] }
  0x1e   : > { %280 = vrot.lane.b32.xlu0 %v270_v2, %s1183_s14  ;;  %273 = vst [vmem:[#allocation1] ss:$2 sm:$0xff] %v267_v1  ;;  %408 = vrot.lane.b32.xlu2 %v271_v3, %s1184_s15  ;;  %v1109_v1 = vld [vmem:[%s1397_s0 + $0x88] sm:$0xff] }
  0x25   : > { %v274_v4 = vld.sshfl [vmem:[#allocation1] sm:$0xff pattern:$0x75316420] }
  0x26   : > { %282 = vrot.lane.b32.xlu0 %v271_v3, %s1183_s14  ;;  %284 = vrot.lane.b32.xlu1 %v274_v4, %s1183_s14 }
  0x27   : > { %410 = vrot.lane.b32.xlu2 %v274_v4, %s1184_s15 }
  0x2e   : > { %406 = vrot.lane.b32.xlu1 %v270_v2, %s1184_s15  ;;  %478 = vrot.lane.b32.xlu0 %v270_v2, %s1185_s16 }
  0x2f   : > { %482 = vrot.lane.b32.xlu2 %v274_v4, %s1185_s16 }
  0x36   : > { %480 = vrot.lane.b32.xlu1 %v271_v3, %s1185_s16  ;;  %550 = vrot.lane.b32.xlu0 %v270_v2, %s1186_s17 }
  0x37   : > { %554 = vrot.lane.b32.xlu2 %v274_v4, %s1186_s17 }
  0x3e   : > { %552 = vrot.lane.b32.xlu1 %v271_v3, %s1186_s17  ;;  %622 = vrot.lane.b32.xlu0 %v270_v2, %s1187_s18 }
  0x3f   : > { %626 = vrot.lane.b32.xlu2 %v274_v4, %s1187_s18 }
  0x46   : > { %624 = vrot.lane.b32.xlu1 %v271_v3, %s1187_s18  ;;  %694 = vrot.lane.b32.xlu0 %v270_v2, %s1188_s19 }
  0x47   : > { %698 = vrot.lane.b32.xlu2 %v274_v4, %s1188_s19 }
  0x4e   : > { %696 = vrot.lane.b32.xlu1 %v271_v3, %s1188_s19  ;;  %766 = vrot.lane.b32.xlu0 %v270_v2, %s1189_s22 }
  0x4f   : > { %770 = vrot.lane.b32.xlu2 %v274_v4, %s1189_s22 }
  0x56   : > { %768 = vrot.lane.b32.xlu1 %v271_v3, %s1189_s22  ;;  %838 = vrot.lane.b32.xlu0 %v270_v2, %s1190_s24 }
  0x57   : > { %842 = vrot.lane.b32.xlu2 %v274_v4, %s1190_s24 }
  0x5e   : > { %840 = vrot.lane.b32.xlu1 %v271_v3, %s1190_s24  ;;  %911 = vperm.xlu0 %1157, %v907_v42  }
  0x66   : > { %916 = vperm.xlu1 %1158, %v908_v43  }
  0x78   : > { %v409_v5 = vpop.permute.xlu2 %408 }
  0x81   : > { %v411_v7 = vpop.permute.xlu2 %410 }
  0x82   : > { %v414_v13 = vsel %vm412_vm2, %v409_v5, %v411_v7 }
  0x89   : > { %v483_v15 = vpop.permute.xlu2 %482 }
  0x90   : > { %v281_v6 = vpop.permute.xlu0 %280 }
  0x91   : > { %v555_v21 = vpop.permute.xlu2 %554 }
  0x98   : > { %v283_v8 = vpop.permute.xlu0 %282  ;;  %v285_v9 = vpop.permute.xlu1 %284 }
  0x99   : > { %v287_v10 = vsel %vm286_vm0, %v281_v6, %v283_v8  ;;  %v288_v11 = vsel %vm286_vm0, %v283_v8, %v285_v9  ;;  %v627_v28 = vpop.permute.xlu2 %626 }
  0x9a   : > { %1048 = vmatpush.msk.msra.mxu0 %vm296_vm1, %v287_v10  ;;  %1122 = vmatpush.msk.msra.mxu2 %vm296_vm1, %v287_v10 }
  0x9b   : > { %1051 = vmatpush.msk.msra.mxu1 %vm296_vm1, %v288_v11  ;;  %1123 = vmatpush.msk.msra.mxu3 %vm296_vm1, %v288_v11 }
  0x9c   : > { %1050 = vmatmul.msk.f32.vlgmr.msra.gmra.mxu2 %vm289_vm3, %v1047_v12  ;;  %1053 = vmatmul.msk.f32.vlgmr.msra.gmra.mxu3 %vm289_vm3, %v1047_v12 }
  0x9d   : > { %1065 = vmatpush.msk.msrb.mxu1 %vm296_vm1, %v414_v13  ;;  %1054 = vmatpush.msk.msrb.mxu2 %vm296_vm1, %v270_v2 }
  0x9e   : > { %1057 = vmatpush.msk.msrb.mxu3 %vm296_vm1, %v271_v3  ;;  %1049 = vmatmul.msk.f32.vlgmr.msra.gmra.mxu0 %vm289_vm3, %v1046_v14 }
  0x9f   : > { %1052 = vmatmul.msk.f32.vlgmr.msra.gmra.mxu1 %vm289_vm3, %v1046_v14 }
  0xa0   : > { %v407_v16 = vpop.permute.xlu1 %406  ;;  %v479_v17 = vpop.permute.xlu0 %478 }
  0xa1   : > { %v413_v18 = vsel %vm412_vm2, %v407_v16, %v409_v5  ;;  %v699_v40 = vpop.permute.xlu2 %698 }
  0xa2   : > { %1062 = vmatpush.msk.msrb.mxu0 %vm296_vm1, %v413_v18 }
  0xa4   : > { %1055 = vmatmul.msk.f32.vlgmr.msrb.gmra.mxu2 %vm289_vm3, %v275_v19  ;;  %1058 = vmatmul.msk.f32.vlgmr.msrb.gmra.mxu3 %vm289_vm3, %v275_v19 }
  0xa6   : > { %1063 = vmatmul.msk.f32.vlgmr.msrb.gmra.mxu0 %vm289_vm3, %v1060_v20 }
  0xa7   : > { %1066 = vmatmul.msk.f32.vlgmr.msrb.gmra.mxu1 %vm289_vm3, %v1060_v20 }
  0xa8   : > { %v481_v22 = vpop.permute.xlu1 %480  ;;  %v551_v23 = vpop.permute.xlu0 %550 }
  0xa9   : > { %v485_v24 = vsel %vm484_vm4, %v479_v17, %v481_v22  ;;  %v486_v25 = vsel %vm484_vm4, %v481_v22, %v483_v15  ;;  %v771_v51 = vpop.permute.xlu2 %770 }
  0xaa   : > { %1070 = vmatpush.msk.msra.mxu2 %vm296_vm1, %v485_v24  ;;  %1073 = vmatpush.msk.msra.mxu3 %vm296_vm1, %v486_v25 }
  0xac   : > { %1056 = vmatmul.msk.f32.gmra.mxu2 %vm289_vm3, %v276_v26  ;;  %1059 = vmatmul.msk.f32.gmra.mxu3 %vm289_vm3, %v276_v26 }
  0xae   : > { %1064 = vmatmul.msk.f32.gmra.mxu0 %vm289_vm3, %v1061_v27 }
  0xaf   : > { %1067 = vmatmul.msk.f32.gmra.mxu1 %vm289_vm3, %v1061_v27 }
  0xb0   : > { %v553_v29 = vpop.permute.xlu1 %552  ;;  %v623_v30 = vpop.permute.xlu0 %622 }
  0xb1   : > { %v557_v31 = vsel %vm556_vm5, %v551_v23, %v553_v29  ;;  %v558_v32 = vsel %vm556_vm5, %v553_v29, %v555_v21  ;;  %v843_v58 = vpop.permute.xlu2 %842 }
  0xb2   : > { %1078 = vmatpush.msk.msra.mxu0 %vm296_vm1, %v557_v31  ;;  %1081 = vmatpush.msk.msra.mxu1 %vm296_vm1, %v558_v32 }
  0xb4   : > { %1071 = vmatmul.msk.f32.vlgmr.msra.gmra.mxu2 %vm289_vm3, %v1068_v33  ;;  %1074 = vmatmul.msk.f32.vlgmr.msra.gmra.mxu3 %vm289_vm3, %v1068_v33 }
  0xb6   : > { %1079 = vmatmul.msk.f32.vlgmr.msra.gmra.mxu0 %vm289_vm3, %v1076_v34 }
  0xb7   : > { %1082 = vmatmul.msk.f32.vlgmr.msra.gmra.mxu1 %vm289_vm3, %v1076_v34 }
  0xb8   : > { %v625_v35 = vpop.permute.xlu1 %624  ;;  %v695_v39 = vpop.permute.xlu0 %694 }
  0xb9   : > { %v629_v36 = vsel %vm628_vm6, %v623_v30, %v625_v35  ;;  %v630_v37 = vsel %vm628_vm6, %v625_v35, %v627_v28 }
  0xba   : > { %1086 = vmatpush.msk.msrb.mxu2 %vm296_vm1, %v629_v36  ;;  %1089 = vmatpush.msk.msrb.mxu3 %vm296_vm1, %v630_v37 }
  0xbc   : > { %1072 = vmatmul.msk.f32.gmra.mxu2 %vm289_vm3, %v1069_v38  ;;  %1075 = vmatmul.msk.f32.gmra.mxu3 %vm289_vm3, %v1069_v38 }
  0xbe   : > { %1080 = vmatmul.msk.f32.gmra.mxu0 %vm289_vm3, %v1077_v41 }
  0xbf   : > { %1083 = vmatmul.msk.f32.gmra.mxu1 %vm289_vm3, %v1077_v41 }
  0xc0   : > { %v697_v44 = vpop.permute.xlu1 %696  ;;  %v767_v50 = vpop.permute.xlu0 %766 }
  0xc1   : > { %v701_v46 = vsel %vm700_vm7, %v695_v39, %v697_v44  ;;  %v702_v47 = vsel %vm700_vm7, %v697_v44, %v699_v40 }
  0xc2   : > { %1094 = vmatpush.msk.msrb.mxu0 %vm296_vm1, %v701_v46  ;;  %1097 = vmatpush.msk.msrb.mxu1 %vm296_vm1, %v702_v47 }
  0xc4   : > { %1087 = vmatmul.msk.f32.vlgmr.msrb.gmra.mxu2 %vm289_vm3, %v1084_v48  ;;  %1090 = vmatmul.msk.f32.vlgmr.msrb.gmra.mxu3 %vm289_vm3, %v1084_v48 }
  0xc6   : > { %1095 = vmatmul.msk.f32.vlgmr.msrb.gmra.mxu0 %vm289_vm3, %v1092_v49 }
  0xc7   : > { %1098 = vmatmul.msk.f32.vlgmr.msrb.gmra.mxu1 %vm289_vm3, %v1092_v49 }
  0xc8   : > { %v769_v52 = vpop.permute.xlu1 %768  ;;  %v839_v57 = vpop.permute.xlu0 %838 }
  0xc9   : > { %v773_v53 = vsel %vm772_vm8, %v767_v50, %v769_v52  ;;  %v774_v54 = vsel %vm772_vm8, %v769_v52, %v771_v51 }
  0xca   : > { %1102 = vmatpush.msk.msra.mxu2 %vm296_vm1, %v773_v53  ;;  %1105 = vmatpush.msk.msra.mxu3 %vm296_vm1, %v774_v54 }
  0xcc   : > { %1088 = vmatmul.msk.f32.gmra.mxu2 %vm289_vm3, %v1085_v55  ;;  %1091 = vmatmul.msk.f32.gmra.mxu3 %vm289_vm3, %v1085_v55 }
  0xce   : > { %1096 = vmatmul.msk.f32.gmra.mxu0 %vm289_vm3, %v1093_v56 }
  0xcf   : > { %1099 = vmatmul.msk.f32.gmra.mxu1 %vm289_vm3, %v1093_v56 }
  0xd0   : > { %v841_v59 = vpop.permute.xlu1 %840 }
  0xd1   : > { %v845_v60 = vsel %vm844_vm9, %v839_v57, %v841_v59  ;;  %v846_v61 = vsel %vm844_vm9, %v841_v59, %v843_v58  ;;  %v912_v58 = vpop.permute.xlu0 %911 }
  0xd2   : > { %1110 = vmatpush.msk.msra.mxu0 %vm296_vm1, %v845_v60  ;;  %1113 = vmatpush.msk.msra.mxu1 %vm296_vm1, %v846_v61  ;;  %v928_v61 = vstv %s923_s25 }
  0xd4   : > { %1103 = vmatmul.msk.f32.vlgmr.msra.gmra.mxu2 %vm289_vm3, %v1100_v62  ;;  %1106 = vmatmul.msk.f32.vlgmr.msra.gmra.mxu3 %vm289_vm3, %v1100_v62 }
  0xd6   : > { %1111 = vmatmul.msk.f32.vlgmr.msra.gmra.mxu0 %vm289_vm3, %v1108_v63 }
  0xd7   : > { %1114 = vmatmul.msk.f32.vlgmr.msra.gmra.mxu1 %vm289_vm3, %v1108_v63 }
  0xdc   : > { %1104 = vmatmul.msk.f32.gmra.mxu2 %vm289_vm3, %v1101_v0  ;;  %1107 = vmatmul.msk.f32.gmra.mxu3 %vm289_vm3, %v1101_v0 }
  0xde   : > { %1112 = vmatmul.msk.f32.gmra.mxu0 %vm289_vm3, %v1109_v1 }
  0xdf   : > { %1115 = vmatmul.msk.f32.gmra.mxu1 %vm289_vm3, %v1109_v1 }
 0x11b   : > { %v318_v2 = vpop.f32.mrf.mxu0 }
 0x11c   : > { %v341_v3 = vpop.f32.mrf.mxu1 }
 0x11f   : > { %v321_v4 = vpop.f32.mrf.mxu2  ;;  %v344_v5 = vpop.f32.mrf.mxu3 }
 0x123   : > { %v442_v6 = vpop.f32.mrf.mxu0 }
 0x124   : > { %v465_v7 = vpop.f32.mrf.mxu1 }
 0x127   : > { %v374_v8 = vpop.f32.mrf.mxu2  ;;  %v397_v9 = vpop.f32.mrf.mxu3 }
 0x128   : > { %v375_v24 = vadd.f32 %v374_v8, %v318_v2  ;;  %v398_v25 = vadd.f32 %v397_v9, %v341_v3 }
 0x12a   : > { %v471_v28 = vadd.f32 %v442_v6, %v375_v24  ;;  %v472_v29 = vadd.f32 %v465_v7, %v398_v25 }
 0x12b   : > { %v445_v10 = vpop.f32.mrf.mxu0 }
 0x12c   : > { %v468_v11 = vpop.f32.mrf.mxu1 }
 0x12f   : > { %v377_v12 = vpop.f32.mrf.mxu2  ;;  %v400_v13 = vpop.f32.mrf.mxu3 }
 0x130   : > { %v378_v34 = vadd.f32 %v377_v12, %v321_v4  ;;  %v401_v35 = vadd.f32 %v400_v13, %v344_v5  ;;  %v917_v12 = vpop.permute.xlu1 %916 }
 0x132   : > { %v473_v40 = vadd.f32 %v445_v10, %v378_v34  ;;  %v474_v41 = vadd.f32 %v468_v11, %v401_v35 }
 0x133   : > { %v586_v14 = vpop.f32.mrf.mxu0 }
 0x134   : > { %v609_v15 = vpop.f32.mrf.mxu1 }
 0x137   : > { %v514_v16 = vpop.f32.mrf.mxu2  ;;  %v537_v17 = vpop.f32.mrf.mxu3 }
 0x138   : > { %v543_v31 = vadd.f32 %v514_v16, %v471_v28  ;;  %v544_v32 = vadd.f32 %v537_v17, %v472_v29 }
 0x13a   : > { %v615_v38 = vadd.f32 %v586_v14, %v543_v31  ;;  %v616_v39 = vadd.f32 %v609_v15, %v544_v32 }
 0x13b   : > { %v589_v18 = vpop.f32.mrf.mxu0 }
 0x13c   : > { %v612_v19 = vpop.f32.mrf.mxu1 }
 0x13f   : > { %v517_v20 = vpop.f32.mrf.mxu2  ;;  %v540_v21 = vpop.f32.mrf.mxu3 }
 0x140   : > { %v545_v44 = vadd.f32 %v517_v20, %v473_v40  ;;  %v546_v45 = vadd.f32 %v540_v21, %v474_v41 }
 0x142   : > { %v617_v50 = vadd.f32 %v589_v18, %v545_v44  ;;  %v618_v51 = vadd.f32 %v612_v19, %v546_v45 }
 0x143   : > { %v730_v22 = vpop.f32.mrf.mxu0 }
 0x144   : > { %v753_v23 = vpop.f32.mrf.mxu1 }
 0x147   : > { %v658_v26 = vpop.f32.mrf.mxu2  ;;  %v681_v27 = vpop.f32.mrf.mxu3 }
 0x148   : > { %v687_v42 = vadd.f32 %v658_v26, %v615_v38  ;;  %v688_v43 = vadd.f32 %v681_v27, %v616_v39 }
 0x14a   : > { %v759_v48 = vadd.f32 %v730_v22, %v687_v42  ;;  %v760_v49 = vadd.f32 %v753_v23, %v688_v43 }
 0x14b   : > { %v733_v30 = vpop.f32.mrf.mxu0 }
 0x14c   : > { %v756_v33 = vpop.f32.mrf.mxu1 }
 0x14f   : > { %v661_v36 = vpop.f32.mrf.mxu2  ;;  %v684_v37 = vpop.f32.mrf.mxu3 }
 0x150   : > { %v689_v56 = vadd.f32 %v661_v36, %v617_v50  ;;  %v690_v57 = vadd.f32 %v684_v37, %v618_v51 }
 0x152   : > { %v761_v0 = vadd.f32 %v733_v30, %v689_v56  ;;  %v762_v1 = vadd.f32 %v756_v33, %v690_v57 }
 0x153   : > { %v874_v46 = vpop.f32.mrf.mxu0 }
 0x154   : > { %v897_v47 = vpop.f32.mrf.mxu1 }
 0x157   : > { %v802_v52 = vpop.f32.mrf.mxu2  ;;  %v825_v53 = vpop.f32.mrf.mxu3 }
 0x158   : > { %v831_v54 = vadd.f32 %v802_v52, %v759_v48  ;;  %v832_v55 = vadd.f32 %v825_v53, %v760_v49 }
 0x15a   : > { %v903_v59 = vadd.f32 %v874_v46, %v831_v54  ;;  %v904_v60 = vadd.f32 %v897_v47, %v832_v55 }
 0x15b   : > { %v877_v4 = vpop.f32.mrf.mxu0 }
 0x15c   : > { %v919_v62 = vadd.f32 %v912_v58, %v903_v59  ;;  %v920_v63 = vadd.f32 %v912_v58, %v904_v60  ;;  %v900_v5 = vpop.f32.mrf.mxu1 }
 0x15e   : > { %vm924_vm10 = vcmp.ge.f32.partialorder %v919_v62, 0.0  ;;  %vm925_vm11 = vcmp.ge.f32.partialorder %v920_v63, 0.0  ;;  %v929_v2 = vmul.f32 %v928_v61, %v919_v62  ;;  %v930_v3 = vmul.f32 %v928_v61, %v920_v63 }
 0x15f   : > { %v805_v6 = vpop.f32.mrf.mxu2  ;;  %v828_v7 = vpop.f32.mrf.mxu3 }
 0x160   : > { %v933_v8 = vsel %vm924_vm10, %v919_v62, %v929_v2  ;;  %v934_v9 = vsel %vm925_vm11, %v920_v63, %v930_v3  ;;  %v833_v10 = vadd.f32 %v805_v6, %v761_v0  ;;  %v834_v11 = vadd.f32 %v828_v7, %v762_v1 }
 0x161   : > { %937 = vst [vmem:[%s246_s20] sm:$0xff] %v933_v8 }
 0x162   : > { %938 = vst [vmem:[%s246_s20 + $0x8] sm:$0xff] %v934_v9  ;;  %v905_v13 = vadd.f32 %v877_v4, %v833_v10  ;;  %v906_v14 = vadd.f32 %v900_v5, %v834_v11 }
 0x164   : > { %v921_v15 = vadd.f32 %v917_v12, %v905_v13  ;;  %v922_v16 = vadd.f32 %v917_v12, %v906_v14 }
 0x166   : > { %vm926_vm12 = vcmp.ge.f32.partialorder %v921_v15, 0.0  ;;  %vm927_vm13 = vcmp.ge.f32.partialorder %v922_v16, 0.0  ;;  %v931_v17 = vmul.f32 %v928_v61, %v921_v15  ;;  %v932_v18 = vmul.f32 %v928_v61, %v922_v16  ;;  %947 = sbr.rel (!%p1250_p4) target bundleno = 371 (0x173), region = 44 }
 0x168   : > { %v935_v19 = vsel %vm926_vm12, %v921_v15, %v931_v17  ;;  %v936_v20 = vsel %vm927_vm13, %v922_v16, %v932_v18  ;;  %v963_v21 = vld [vmem:[%s246_s20] sm:$0xff] (%p1250_p4) }
 0x169   : > { %939 = vst [vmem:[%s246_s20 + $0x10] sm:$0xff] %v935_v19  ;;  %v965_v22 = vld [vmem:[%s246_s20 + $0x8] sm:$0xff] (%p1250_p4) }
 0x16a   : > { %940 = vst [vmem:[%s246_s20 + $0x18] sm:$0xff] %v936_v20 }
 0x16b   : > { %964 = vst [vmem:[%s950_s8] sm:$0xff] %v963_v21 }
 0x16c   : > { %966 = vst [vmem:[%s950_s8 + $0x8] sm:$0xff] %v965_v22 }
 0x170   : > { %v967_v23 = vld [vmem:[%s246_s20 + $0x10] sm:$0xff] }
 0x171   : > { %v969_v24 = vld [vmem:[%s246_s20 + $0x18] sm:$0xff]  ;;  %968 = vst [vmem:[%s950_s8 + $0x30] sm:$0xff] %v967_v23 }
 0x172   : > { %970 = vst [vmem:[%s950_s8 + $0x38] sm:$0xff] %v969_v24 }
 0x173 PF: > { %p13_p10 = scmp.ge.s32.totalorder %s1240_s23, 5   ;;  %s1404_s20 = smov %s1177_s21 }
 0x174   : > { %s1405_s21 = smov %s1248_s26  ;;  %s1406_s22 = smov %s1240_s23 }
 0x175   :  { %15 = sbr.rel (!%p13_p10) target bundleno = 4 (0x4), region = 104 }

</bundles_post_ra>
